<compile_context>
chip_gen: v6e
topology: v6e:2x2x1
jax: 0.10.0
libtpu: 0.0.40
codegen_flags: <defaults>
</compile_context>

<pallas_src>
import jax
import jax.numpy as jnp
from jax.experimental import pallas as pl
from jax.experimental.pallas import tpu as pltpu


def _ga_kernel(rel_ref, x_ref, emb_ref, lin_ref, bias_ref, o_ref):
    # rel_ref:  [BB, S, S] int32   relation ids for this batch block   (VMEM)
    # x_ref:    [BB, S, D] f32     input features                      (VMEM)
    # emb_ref:  [R, H]     f32     relation-embedding table            (SMEM, scalar reads)
    # lin_ref:  [L, S, H]  f32     per-layer head-mixing weights       (VMEM)
    # bias_ref: [L, S, 1]  f32     per-layer biases                    (VMEM)
    # o_ref:    [BB, S, D] f32     output features                     (VMEM)
    BB, S, _ = rel_ref.shape
    R, H = emb_ref.shape
    L = lin_ref.shape[0]

    # Per-layer parameters loaded once as whole tiles (no per-layer sub-slicing of the ref).
    lin_all = lin_ref[...].astype(jnp.float32)    # [L, S, H]
    bias_all = bias_ref[...].astype(jnp.float32)  # [L, S, 1]

    for b in range(BB):
        rel = rel_ref[b]                          # [S, S] int32

        # --- fused embedding gather: logits[h,i,j] = rel_emb[rel[i,j], h] ---------------
        # R is tiny, so build each head's logits with a chain of scalar-broadcast selects
        # (the scalar comes straight from SMEM); no gather / relayout needed.
        masks = [rel == r for r in range(R)]      # R bool [S, S] tiles (computed once)
        heads = []
        for h in range(H):
            lg = jnp.where(masks[0], emb_ref[0, h], jnp.zeros((S, S), jnp.float32))
            for r in range(1, R):
                lg = jnp.where(masks[r], emb_ref[r, h], lg)
            heads.append(lg[None])                # [1, S, S]
        logits = jnp.concatenate(heads, axis=0)   # [H, S, S]

        # --- softmax over the key axis j, all heads in one pass --------------------------
        logits = logits - jnp.max(logits, axis=-1, keepdims=True)
        e = jnp.exp(logits)
        attn = e / jnp.sum(e, axis=-1, keepdims=True)   # [H, S, S]

        # --- layers: contract heads first (VPU on [S,S]), then one MXU matmul ------------
        xb = x_ref[b].astype(jnp.float32)         # [S, D]
        for l in range(L):
            lin = lin_all[l]                       # [S, H]
            m = attn[0] * lin[:, 0:1]              # [S, S] * [S, 1] lane-broadcast
            for h in range(1, H):
                m = m + attn[h] * lin[:, h:h + 1]
            xb = jnp.tanh(
                jnp.dot(m, xb, preferred_element_type=jnp.float32) + bias_all[l])
        o_ref[b] = xb.astype(o_ref.dtype)


def ga_forward(x, relations, rel_emb, lins, biases, *, batch_block=None):
    """x: [B,S,D] f32, relations: [B,S,S] int, rel_emb: [R,H], lins: [L,S,H], biases: [L,S,1]."""
    B, S, D = x.shape
    L, _, H = lins.shape
    R = rel_emb.shape[0]

    if batch_block is None:
        # Collapse the batch grid: on single-TensorCore chips (v5e/v6e) grid=(B,) is just a
        # serial loop with per-step pipeline overhead, so one invocation is strictly better.
        # On v7x (2 TCs/chip) pass batch_block=pl.cdiv(B, 2) so the "parallel" batch axis
        # shards across both cores.
        batch_block = B
    assert B % batch_block == 0
    grid = (B // batch_block,)

    relations = relations.astype(jnp.int32)
    rel_emb = rel_emb.astype(jnp.float32)

    return pl.pallas_call(
        _ga_kernel,
        out_shape=jax.ShapeDtypeStruct((B, S, D), x.dtype),
        grid_spec=pltpu.PrefetchScalarGridSpec(
            num_scalar_prefetch=0,
            grid=grid,
            in_specs=[
                pl.BlockSpec((batch_block, S, S), lambda g: (g, 0, 0)),          # relations
                pl.BlockSpec((batch_block, S, D), lambda g: (g, 0, 0)),          # x
                pl.BlockSpec(memory_space=pltpu.MemorySpace.SMEM),               # rel_emb
                pl.BlockSpec((L, S, H), lambda g: (0, 0, 0)),                    # lins
                pl.BlockSpec((L, S, 1), lambda g: (0, 0, 0)),                    # biases
            ],
            out_specs=pl.BlockSpec((batch_block, S, D), lambda g: (g, 0, 0)),
        ),
        compiler_params=pltpu.CompilerParams(
            dimension_semantics=("parallel",)),
    )(relations, x, rel_emb, lins, biases)


def ga_reference(x, relations, rel_emb, lins, biases):
    """Pure-JAX reference matching the PyTorch forward exactly."""
    A = rel_emb[relations]                      # [B, S, S, H]
    A = jnp.transpose(A, (0, 3, 1, 2))          # [B, H, S, S]
    A = jax.nn.softmax(A, axis=-1)
    L = lins.shape[0]
    for l in range(L):
        ax = jnp.einsum('bhsj,bjd->bhsd', A, x)             # [B, H, S, D]
        r = jnp.einsum('bhsd,sh->bsd', ax, lins[l]) + biases[l][None]
        x = jnp.tanh(r)
    return x


if __name__ == "__main__":
    # Small shapes consistent with the module.
    B, S, D = 2, 8, 32          # batch, seq_len, feature dim
    H = 4                       # num_heads
    R = 6                       # num_relations
    L = 2                       # num_layers

    key = jax.random.PRNGKey(0)
    k_emb, k_lin, k_bias, k_x, k_rel = jax.random.split(key, 5)

    # Deterministic parameter init (mirrors nn.Embedding + randn params).
    rel_emb = jax.random.normal(k_emb, (R, H), dtype=jnp.float32)
    rel_emb = rel_emb.at[0].set(0.0)            # padding_idx=0
    # lin_i has shape [S, H, 1] in PyTorch; we keep the squeezed [L, S, H].
    lins = jax.random.normal(k_lin, (L, S, H), dtype=jnp.float32)
    biases = jax.random.normal(k_bias, (L, S, 1), dtype=jnp.float32)

    x = jax.random.normal(k_x, (B, S, D), dtype=jnp.float32)
    relations = jax.random.randint(k_rel, (B, S, S), 0, R, dtype=jnp.int32)

    out = ga_forward(x, relations, rel_emb, lins, biases)
    out = jax.block_until_ready(out)

    ref = jax.block_until_ready(ga_reference(x, relations, rel_emb, lins, biases))
    assert out.shape == (B, S, D)
    assert jnp.allclose(out, ref, atol=1e-5, rtol=1e-5)

    print("KERNEL_OK")
</pallas_src>

<mosaic_0001>
module attributes {stable_mosaic.version = 11 : i64} {
  func.func @_ga_kernel(%arg0: i32, %arg1: memref<2x8x8xi32, #tpu.memory_space<vmem>>, %arg2: memref<2x8x32xf32, #tpu.memory_space<vmem>>, %arg3: memref<6x4xf32, #tpu.memory_space<smem>>, %arg4: memref<2x8x4xf32, #tpu.memory_space<vmem>>, %arg5: memref<2x8x1xf32, #tpu.memory_space<vmem>>, %arg6: memref<2x8x32xf32, #tpu.memory_space<vmem>>) attributes {dimension_semantics = [#tpu.dimension_semantics<parallel>], iteration_bounds = array<i64: 1>, scalar_prefetch = 0 : i64, scratch_operands = 0 : i64, tpu.core_type = #tpu.core_type<tc>, window_params = [{transform_indices = @transform_0, window_bounds = array<i64: 2, 8, 8>}, {transform_indices = @transform_1, window_bounds = array<i64: 2, 8, 32>}, {transform_indices = @transform_2, window_bounds = array<i64: 6, 4>}, {pipeline_mode = #tpu.pipeline_mode<synchronous>, transform_indices = @transform_3, window_bounds = array<i64: 2, 8, 4>}, {pipeline_mode = #tpu.pipeline_mode<synchronous>, transform_indices = @transform_4, window_bounds = array<i64: 2, 8, 1>}, {transform_indices = @transform_5, window_bounds = array<i64: 2, 8, 32>}]} {
    %c0 = arith.constant 0 : index
    %c0_0 = arith.constant 0 : index
    %c0_1 = arith.constant 0 : index
    %0 = vector.load %arg4[%c0, %c0_0, %c0_1] : memref<2x8x4xf32, #tpu.memory_space<vmem>>, vector<2x8x4xf32>
    %c0_2 = arith.constant 0 : index
    %c0_3 = arith.constant 0 : index
    %c0_4 = arith.constant 0 : index
    %1 = vector.load %arg5[%c0_2, %c0_3, %c0_4] : memref<2x8x1xf32, #tpu.memory_space<vmem>>, vector<2x8x1xf32>
    %c0_5 = arith.constant 0 : index
    %c0_6 = arith.constant 0 : index
    %c0_7 = arith.constant 0 : index
    %2 = vector.load %arg1[%c0_5, %c0_6, %c0_7] : memref<2x8x8xi32, #tpu.memory_space<vmem>>, vector<1x8x8xi32>
    %3 = vector.shape_cast %2 : vector<1x8x8xi32> to vector<8x8xi32>
    %c0_i32 = arith.constant 0 : i32
    %4 = vector.broadcast %c0_i32 : i32 to vector<8x8xi32>
    %5 = arith.cmpi eq, %3, %4 : vector<8x8xi32>
    %c1_i32 = arith.constant 1 : i32
    %6 = vector.broadcast %c1_i32 : i32 to vector<8x8xi32>
    %7 = arith.cmpi eq, %3, %6 : vector<8x8xi32>
    %c2_i32 = arith.constant 2 : i32
    %8 = vector.broadcast %c2_i32 : i32 to vector<8x8xi32>
    %9 = arith.cmpi eq, %3, %8 : vector<8x8xi32>
    %c3_i32 = arith.constant 3 : i32
    %10 = vector.broadcast %c3_i32 : i32 to vector<8x8xi32>
    %11 = arith.cmpi eq, %3, %10 : vector<8x8xi32>
    %c4_i32 = arith.constant 4 : i32
    %12 = vector.broadcast %c4_i32 : i32 to vector<8x8xi32>
    %13 = arith.cmpi eq, %3, %12 : vector<8x8xi32>
    %c5_i32 = arith.constant 5 : i32
    %14 = vector.broadcast %c5_i32 : i32 to vector<8x8xi32>
    %15 = arith.cmpi eq, %3, %14 : vector<8x8xi32>
    %c0_8 = arith.constant 0 : index
    %c0_9 = arith.constant 0 : index
    %16 = memref.load %arg3[%c0_8, %c0_9] : memref<6x4xf32, #tpu.memory_space<smem>>
    %cst = arith.constant 0.000000e+00 : f32
    %17 = vector.broadcast %cst : f32 to vector<8x8xf32>
    %18 = vector.broadcast %16 : f32 to vector<8x8xf32>
    %19 = arith.select %5, %18, %17 : vector<8x8xi1>, vector<8x8xf32>
    %c1 = arith.constant 1 : index
    %c0_10 = arith.constant 0 : index
    %20 = memref.load %arg3[%c1, %c0_10] : memref<6x4xf32, #tpu.memory_space<smem>>
    %21 = vector.broadcast %20 : f32 to vector<8x8xf32>
    %22 = arith.select %7, %21, %19 : vector<8x8xi1>, vector<8x8xf32>
    %c2 = arith.constant 2 : index
    %c0_11 = arith.constant 0 : index
    %23 = memref.load %arg3[%c2, %c0_11] : memref<6x4xf32, #tpu.memory_space<smem>>
    %24 = vector.broadcast %23 : f32 to vector<8x8xf32>
    %25 = arith.select %9, %24, %22 : vector<8x8xi1>, vector<8x8xf32>
    %c3 = arith.constant 3 : index
    %c0_12 = arith.constant 0 : index
    %26 = memref.load %arg3[%c3, %c0_12] : memref<6x4xf32, #tpu.memory_space<smem>>
    %27 = vector.broadcast %26 : f32 to vector<8x8xf32>
    %28 = arith.select %11, %27, %25 : vector<8x8xi1>, vector<8x8xf32>
    %c4 = arith.constant 4 : index
    %c0_13 = arith.constant 0 : index
    %29 = memref.load %arg3[%c4, %c0_13] : memref<6x4xf32, #tpu.memory_space<smem>>
    %30 = vector.broadcast %29 : f32 to vector<8x8xf32>
    %31 = arith.select %13, %30, %28 : vector<8x8xi1>, vector<8x8xf32>
    %c5 = arith.constant 5 : index
    %c0_14 = arith.constant 0 : index
    %32 = memref.load %arg3[%c5, %c0_14] : memref<6x4xf32, #tpu.memory_space<smem>>
    %33 = vector.broadcast %32 : f32 to vector<8x8xf32>
    %34 = arith.select %15, %33, %31 : vector<8x8xi1>, vector<8x8xf32>
    %35 = vector.shape_cast %34 : vector<8x8xf32> to vector<1x8x8xf32>
    %c0_15 = arith.constant 0 : index
    %c1_16 = arith.constant 1 : index
    %36 = memref.load %arg3[%c0_15, %c1_16] : memref<6x4xf32, #tpu.memory_space<smem>>
    %cst_17 = arith.constant 0.000000e+00 : f32
    %37 = vector.broadcast %cst_17 : f32 to vector<8x8xf32>
    %38 = vector.broadcast %36 : f32 to vector<8x8xf32>
    %39 = arith.select %5, %38, %37 : vector<8x8xi1>, vector<8x8xf32>
    %c1_18 = arith.constant 1 : index
    %c1_19 = arith.constant 1 : index
    %40 = memref.load %arg3[%c1_18, %c1_19] : memref<6x4xf32, #tpu.memory_space<smem>>
    %41 = vector.broadcast %40 : f32 to vector<8x8xf32>
    %42 = arith.select %7, %41, %39 : vector<8x8xi1>, vector<8x8xf32>
    %c2_20 = arith.constant 2 : index
    %c1_21 = arith.constant 1 : index
    %43 = memref.load %arg3[%c2_20, %c1_21] : memref<6x4xf32, #tpu.memory_space<smem>>
    %44 = vector.broadcast %43 : f32 to vector<8x8xf32>
    %45 = arith.select %9, %44, %42 : vector<8x8xi1>, vector<8x8xf32>
    %c3_22 = arith.constant 3 : index
    %c1_23 = arith.constant 1 : index
    %46 = memref.load %arg3[%c3_22, %c1_23] : memref<6x4xf32, #tpu.memory_space<smem>>
    %47 = vector.broadcast %46 : f32 to vector<8x8xf32>
    %48 = arith.select %11, %47, %45 : vector<8x8xi1>, vector<8x8xf32>
    %c4_24 = arith.constant 4 : index
    %c1_25 = arith.constant 1 : index
    %49 = memref.load %arg3[%c4_24, %c1_25] : memref<6x4xf32, #tpu.memory_space<smem>>
    %50 = vector.broadcast %49 : f32 to vector<8x8xf32>
    %51 = arith.select %13, %50, %48 : vector<8x8xi1>, vector<8x8xf32>
    %c5_26 = arith.constant 5 : index
    %c1_27 = arith.constant 1 : index
    %52 = memref.load %arg3[%c5_26, %c1_27] : memref<6x4xf32, #tpu.memory_space<smem>>
    %53 = vector.broadcast %52 : f32 to vector<8x8xf32>
    %54 = arith.select %15, %53, %51 : vector<8x8xi1>, vector<8x8xf32>
    %55 = vector.shape_cast %54 : vector<8x8xf32> to vector<1x8x8xf32>
    %c0_28 = arith.constant 0 : index
    %c2_29 = arith.constant 2 : index
    %56 = memref.load %arg3[%c0_28, %c2_29] : memref<6x4xf32, #tpu.memory_space<smem>>
    %cst_30 = arith.constant 0.000000e+00 : f32
    %57 = vector.broadcast %cst_30 : f32 to vector<8x8xf32>
    %58 = vector.broadcast %56 : f32 to vector<8x8xf32>
    %59 = arith.select %5, %58, %57 : vector<8x8xi1>, vector<8x8xf32>
    %c1_31 = arith.constant 1 : index
    %c2_32 = arith.constant 2 : index
    %60 = memref.load %arg3[%c1_31, %c2_32] : memref<6x4xf32, #tpu.memory_space<smem>>
    %61 = vector.broadcast %60 : f32 to vector<8x8xf32>
    %62 = arith.select %7, %61, %59 : vector<8x8xi1>, vector<8x8xf32>
    %c2_33 = arith.constant 2 : index
    %c2_34 = arith.constant 2 : index
    %63 = memref.load %arg3[%c2_33, %c2_34] : memref<6x4xf32, #tpu.memory_space<smem>>
    %64 = vector.broadcast %63 : f32 to vector<8x8xf32>
    %65 = arith.select %9, %64, %62 : vector<8x8xi1>, vector<8x8xf32>
    %c3_35 = arith.constant 3 : index
    %c2_36 = arith.constant 2 : index
    %66 = memref.load %arg3[%c3_35, %c2_36] : memref<6x4xf32, #tpu.memory_space<smem>>
    %67 = vector.broadcast %66 : f32 to vector<8x8xf32>
    %68 = arith.select %11, %67, %65 : vector<8x8xi1>, vector<8x8xf32>
    %c4_37 = arith.constant 4 : index
    %c2_38 = arith.constant 2 : index
    %69 = memref.load %arg3[%c4_37, %c2_38] : memref<6x4xf32, #tpu.memory_space<smem>>
    %70 = vector.broadcast %69 : f32 to vector<8x8xf32>
    %71 = arith.select %13, %70, %68 : vector<8x8xi1>, vector<8x8xf32>
    %c5_39 = arith.constant 5 : index
    %c2_40 = arith.constant 2 : index
    %72 = memref.load %arg3[%c5_39, %c2_40] : memref<6x4xf32, #tpu.memory_space<smem>>
    %73 = vector.broadcast %72 : f32 to vector<8x8xf32>
    %74 = arith.select %15, %73, %71 : vector<8x8xi1>, vector<8x8xf32>
    %75 = vector.shape_cast %74 : vector<8x8xf32> to vector<1x8x8xf32>
    %c0_41 = arith.constant 0 : index
    %c3_42 = arith.constant 3 : index
    %76 = memref.load %arg3[%c0_41, %c3_42] : memref<6x4xf32, #tpu.memory_space<smem>>
    %cst_43 = arith.constant 0.000000e+00 : f32
    %77 = vector.broadcast %cst_43 : f32 to vector<8x8xf32>
    %78 = vector.broadcast %76 : f32 to vector<8x8xf32>
    %79 = arith.select %5, %78, %77 : vector<8x8xi1>, vector<8x8xf32>
    %c1_44 = arith.constant 1 : index
    %c3_45 = arith.constant 3 : index
    %80 = memref.load %arg3[%c1_44, %c3_45] : memref<6x4xf32, #tpu.memory_space<smem>>
    %81 = vector.broadcast %80 : f32 to vector<8x8xf32>
    %82 = arith.select %7, %81, %79 : vector<8x8xi1>, vector<8x8xf32>
    %c2_46 = arith.constant 2 : index
    %c3_47 = arith.constant 3 : index
    %83 = memref.load %arg3[%c2_46, %c3_47] : memref<6x4xf32, #tpu.memory_space<smem>>
    %84 = vector.broadcast %83 : f32 to vector<8x8xf32>
    %85 = arith.select %9, %84, %82 : vector<8x8xi1>, vector<8x8xf32>
    %c3_48 = arith.constant 3 : index
    %c3_49 = arith.constant 3 : index
    %86 = memref.load %arg3[%c3_48, %c3_49] : memref<6x4xf32, #tpu.memory_space<smem>>
    %87 = vector.broadcast %86 : f32 to vector<8x8xf32>
    %88 = arith.select %11, %87, %85 : vector<8x8xi1>, vector<8x8xf32>
    %c4_50 = arith.constant 4 : index
    %c3_51 = arith.constant 3 : index
    %89 = memref.load %arg3[%c4_50, %c3_51] : memref<6x4xf32, #tpu.memory_space<smem>>
    %90 = vector.broadcast %89 : f32 to vector<8x8xf32>
    %91 = arith.select %13, %90, %88 : vector<8x8xi1>, vector<8x8xf32>
    %c5_52 = arith.constant 5 : index
    %c3_53 = arith.constant 3 : index
    %92 = memref.load %arg3[%c5_52, %c3_53] : memref<6x4xf32, #tpu.memory_space<smem>>
    %93 = vector.broadcast %92 : f32 to vector<8x8xf32>
    %94 = arith.select %15, %93, %91 : vector<8x8xi1>, vector<8x8xf32>
    %95 = vector.shape_cast %94 : vector<8x8xf32> to vector<1x8x8xf32>
    %96 = tpu.concatenate %35, %55, %75, %95 in 0 : vector<1x8x8xf32>, vector<1x8x8xf32>, vector<1x8x8xf32>, vector<1x8x8xf32> -> vector<4x8x8xf32>
    %cst_54 = arith.constant dense<0xFF800000> : vector<4x8xf32>
    %97 = vector.multi_reduction <maximumf>, %96, %cst_54 [2] : vector<4x8x8xf32> to vector<4x8xf32>
    %98 = vector.shape_cast %97 : vector<4x8xf32> to vector<4x8x1xf32>
    %99 = vector.broadcast %98 : vector<4x8x1xf32> to vector<4x8x8xf32>
    %100 = arith.subf %96, %99 : vector<4x8x8xf32>
    %101 = math.exp %100 : vector<4x8x8xf32>
    %cst_55 = arith.constant dense<0.000000e+00> : vector<4x8xf32>
    %102 = vector.multi_reduction <add>, %101, %cst_55 [2] : vector<4x8x8xf32> to vector<4x8xf32>
    %103 = vector.shape_cast %102 : vector<4x8xf32> to vector<4x8x1xf32>
    %104 = vector.broadcast %103 : vector<4x8x1xf32> to vector<4x8x8xf32>
    %105 = arith.divf %101, %104 : vector<4x8x8xf32>
    %c0_56 = arith.constant 0 : index
    %c0_57 = arith.constant 0 : index
    %c0_58 = arith.constant 0 : index
    %106 = vector.load %arg2[%c0_56, %c0_57, %c0_58] : memref<2x8x32xf32, #tpu.memory_space<vmem>>, vector<1x8x32xf32>
    %107 = vector.shape_cast %106 : vector<1x8x32xf32> to vector<8x32xf32>
    %108 = vector.extract_strided_slice %0 {offsets = [0, 0, 0], sizes = [1, 8, 4], strides = [1, 1, 1]} : vector<2x8x4xf32> to vector<1x8x4xf32>
    %109 = vector.shape_cast %108 : vector<1x8x4xf32> to vector<8x4xf32>
    %110 = vector.extract_strided_slice %105 {offsets = [0, 0, 0], sizes = [1, 8, 8], strides = [1, 1, 1]} : vector<4x8x8xf32> to vector<1x8x8xf32>
    %111 = vector.shape_cast %110 : vector<1x8x8xf32> to vector<8x8xf32>
    %112 = vector.extract_strided_slice %109 {offsets = [0, 0], sizes = [8, 1], strides = [1, 1]} : vector<8x4xf32> to vector<8x1xf32>
    %113 = vector.broadcast %112 : vector<8x1xf32> to vector<8x8xf32>
    %114 = arith.mulf %111, %113 : vector<8x8xf32>
    %115 = vector.extract_strided_slice %105 {offsets = [1, 0, 0], sizes = [1, 8, 8], strides = [1, 1, 1]} : vector<4x8x8xf32> to vector<1x8x8xf32>
    %116 = vector.shape_cast %115 : vector<1x8x8xf32> to vector<8x8xf32>
    %117 = vector.extract_strided_slice %109 {offsets = [0, 1], sizes = [8, 1], strides = [1, 1]} : vector<8x4xf32> to vector<8x1xf32>
    %118 = vector.broadcast %117 : vector<8x1xf32> to vector<8x8xf32>
    %119 = arith.mulf %116, %118 : vector<8x8xf32>
    %120 = arith.addf %114, %119 : vector<8x8xf32>
    %121 = vector.extract_strided_slice %105 {offsets = [2, 0, 0], sizes = [1, 8, 8], strides = [1, 1, 1]} : vector<4x8x8xf32> to vector<1x8x8xf32>
    %122 = vector.shape_cast %121 : vector<1x8x8xf32> to vector<8x8xf32>
    %123 = vector.extract_strided_slice %109 {offsets = [0, 2], sizes = [8, 1], strides = [1, 1]} : vector<8x4xf32> to vector<8x1xf32>
    %124 = vector.broadcast %123 : vector<8x1xf32> to vector<8x8xf32>
    %125 = arith.mulf %122, %124 : vector<8x8xf32>
    %126 = arith.addf %120, %125 : vector<8x8xf32>
    %127 = vector.extract_strided_slice %105 {offsets = [3, 0, 0], sizes = [1, 8, 8], strides = [1, 1, 1]} : vector<4x8x8xf32> to vector<1x8x8xf32>
    %128 = vector.shape_cast %127 : vector<1x8x8xf32> to vector<8x8xf32>
    %129 = vector.extract_strided_slice %109 {offsets = [0, 3], sizes = [8, 1], strides = [1, 1]} : vector<8x4xf32> to vector<8x1xf32>
    %130 = vector.broadcast %129 : vector<8x1xf32> to vector<8x8xf32>
    %131 = arith.mulf %128, %130 : vector<8x8xf32>
    %132 = arith.addf %126, %131 : vector<8x8xf32>
    %cst_59 = arith.constant dense<0.000000e+00> : vector<8x32xf32>
    %133 = tpu.matmul %132, %107, %cst_59 {dimension_numbers = #tpu.dot_dimension_numbers<[1], [0], [0], [1], [0, 0, 1, 1], [], []>} : vector<8x8xf32>, vector<8x32xf32>, vector<8x32xf32> -> vector<8x32xf32>
    %134 = vector.extract_strided_slice %1 {offsets = [0, 0, 0], sizes = [1, 8, 1], strides = [1, 1, 1]} : vector<2x8x1xf32> to vector<1x8x1xf32>
    %135 = vector.shape_cast %134 : vector<1x8x1xf32> to vector<8x1xf32>
    %136 = vector.broadcast %135 : vector<8x1xf32> to vector<8x32xf32>
    %137 = arith.addf %133, %136 : vector<8x32xf32>
    %138 = math.tanh %137 : vector<8x32xf32>
    %139 = vector.extract_strided_slice %0 {offsets = [1, 0, 0], sizes = [1, 8, 4], strides = [1, 1, 1]} : vector<2x8x4xf32> to vector<1x8x4xf32>
    %140 = vector.shape_cast %139 : vector<1x8x4xf32> to vector<8x4xf32>
    %141 = vector.extract_strided_slice %105 {offsets = [0, 0, 0], sizes = [1, 8, 8], strides = [1, 1, 1]} : vector<4x8x8xf32> to vector<1x8x8xf32>
    %142 = vector.shape_cast %141 : vector<1x8x8xf32> to vector<8x8xf32>
    %143 = vector.extract_strided_slice %140 {offsets = [0, 0], sizes = [8, 1], strides = [1, 1]} : vector<8x4xf32> to vector<8x1xf32>
    %144 = vector.broadcast %143 : vector<8x1xf32> to vector<8x8xf32>
    %145 = arith.mulf %142, %144 : vector<8x8xf32>
    %146 = vector.extract_strided_slice %105 {offsets = [1, 0, 0], sizes = [1, 8, 8], strides = [1, 1, 1]} : vector<4x8x8xf32> to vector<1x8x8xf32>
    %147 = vector.shape_cast %146 : vector<1x8x8xf32> to vector<8x8xf32>
    %148 = vector.extract_strided_slice %140 {offsets = [0, 1], sizes = [8, 1], strides = [1, 1]} : vector<8x4xf32> to vector<8x1xf32>
    %149 = vector.broadcast %148 : vector<8x1xf32> to vector<8x8xf32>
    %150 = arith.mulf %147, %149 : vector<8x8xf32>
    %151 = arith.addf %145, %150 : vector<8x8xf32>
    %152 = vector.extract_strided_slice %105 {offsets = [2, 0, 0], sizes = [1, 8, 8], strides = [1, 1, 1]} : vector<4x8x8xf32> to vector<1x8x8xf32>
    %153 = vector.shape_cast %152 : vector<1x8x8xf32> to vector<8x8xf32>
    %154 = vector.extract_strided_slice %140 {offsets = [0, 2], sizes = [8, 1], strides = [1, 1]} : vector<8x4xf32> to vector<8x1xf32>
    %155 = vector.broadcast %154 : vector<8x1xf32> to vector<8x8xf32>
    %156 = arith.mulf %153, %155 : vector<8x8xf32>
    %157 = arith.addf %151, %156 : vector<8x8xf32>
    %158 = vector.extract_strided_slice %105 {offsets = [3, 0, 0], sizes = [1, 8, 8], strides = [1, 1, 1]} : vector<4x8x8xf32> to vector<1x8x8xf32>
    %159 = vector.shape_cast %158 : vector<1x8x8xf32> to vector<8x8xf32>
    %160 = vector.extract_strided_slice %140 {offsets = [0, 3], sizes = [8, 1], strides = [1, 1]} : vector<8x4xf32> to vector<8x1xf32>
    %161 = vector.broadcast %160 : vector<8x1xf32> to vector<8x8xf32>
    %162 = arith.mulf %159, %161 : vector<8x8xf32>
    %163 = arith.addf %157, %162 : vector<8x8xf32>
    %cst_60 = arith.constant dense<0.000000e+00> : vector<8x32xf32>
    %164 = tpu.matmul %163, %138, %cst_60 {dimension_numbers = #tpu.dot_dimension_numbers<[1], [0], [0], [1], [0, 0, 1, 1], [], []>} : vector<8x8xf32>, vector<8x32xf32>, vector<8x32xf32> -> vector<8x32xf32>
    %165 = vector.extract_strided_slice %1 {offsets = [1, 0, 0], sizes = [1, 8, 1], strides = [1, 1, 1]} : vector<2x8x1xf32> to vector<1x8x1xf32>
    %166 = vector.shape_cast %165 : vector<1x8x1xf32> to vector<8x1xf32>
    %167 = vector.broadcast %166 : vector<8x1xf32> to vector<8x32xf32>
    %168 = arith.addf %164, %167 : vector<8x32xf32>
    %169 = math.tanh %168 : vector<8x32xf32>
    %c0_61 = arith.constant 0 : index
    %c0_62 = arith.constant 0 : index
    %c0_63 = arith.constant 0 : index
    %170 = vector.load %arg6[%c0_61, %c0_62, %c0_63] : memref<2x8x32xf32, #tpu.memory_space<vmem>>, vector<1x8x32xf32>
    %171 = vector.shape_cast %170 : vector<1x8x32xf32> to vector<8x32xf32>
    %172 = vector.shape_cast %169 : vector<8x32xf32> to vector<1x8x32xf32>
    tpu.vector_store %arg6[%c0_61, %c0_62, %c0_63], %172 {strides = array<i32>} : memref<2x8x32xf32, #tpu.memory_space<vmem>>, vector<1x8x32xf32>,
    %c1_64 = arith.constant 1 : index
    %c0_65 = arith.constant 0 : index
    %c0_66 = arith.constant 0 : index
    %173 = vector.load %arg1[%c1_64, %c0_65, %c0_66] : memref<2x8x8xi32, #tpu.memory_space<vmem>>, vector<1x8x8xi32>
    %174 = vector.shape_cast %173 : vector<1x8x8xi32> to vector<8x8xi32>
    %c0_i32_67 = arith.constant 0 : i32
    %175 = vector.broadcast %c0_i32_67 : i32 to vector<8x8xi32>
    %176 = arith.cmpi eq, %174, %175 : vector<8x8xi32>
    %c1_i32_68 = arith.constant 1 : i32
    %177 = vector.broadcast %c1_i32_68 : i32 to vector<8x8xi32>
    %178 = arith.cmpi eq, %174, %177 : vector<8x8xi32>
    %c2_i32_69 = arith.constant 2 : i32
    %179 = vector.broadcast %c2_i32_69 : i32 to vector<8x8xi32>
    %180 = arith.cmpi eq, %174, %179 : vector<8x8xi32>
    %c3_i32_70 = arith.constant 3 : i32
    %181 = vector.broadcast %c3_i32_70 : i32 to vector<8x8xi32>
    %182 = arith.cmpi eq, %174, %181 : vector<8x8xi32>
    %c4_i32_71 = arith.constant 4 : i32
    %183 = vector.broadcast %c4_i32_71 : i32 to vector<8x8xi32>
    %184 = arith.cmpi eq, %174, %183 : vector<8x8xi32>
    %c5_i32_72 = arith.constant 5 : i32
    %185 = vector.broadcast %c5_i32_72 : i32 to vector<8x8xi32>
    %186 = arith.cmpi eq, %174, %185 : vector<8x8xi32>
    %c0_73 = arith.constant 0 : index
    %c0_74 = arith.constant 0 : index
    %187 = memref.load %arg3[%c0_73, %c0_74] : memref<6x4xf32, #tpu.memory_space<smem>>
    %cst_75 = arith.constant 0.000000e+00 : f32
    %188 = vector.broadcast %cst_75 : f32 to vector<8x8xf32>
    %189 = vector.broadcast %187 : f32 to vector<8x8xf32>
    %190 = arith.select %176, %189, %188 : vector<8x8xi1>, vector<8x8xf32>
    %c1_76 = arith.constant 1 : index
    %c0_77 = arith.constant 0 : index
    %191 = memref.load %arg3[%c1_76, %c0_77] : memref<6x4xf32, #tpu.memory_space<smem>>
    %192 = vector.broadcast %191 : f32 to vector<8x8xf32>
    %193 = arith.select %178, %192, %190 : vector<8x8xi1>, vector<8x8xf32>
    %c2_78 = arith.constant 2 : index
    %c0_79 = arith.constant 0 : index
    %194 = memref.load %arg3[%c2_78, %c0_79] : memref<6x4xf32, #tpu.memory_space<smem>>
    %195 = vector.broadcast %194 : f32 to vector<8x8xf32>
    %196 = arith.select %180, %195, %193 : vector<8x8xi1>, vector<8x8xf32>
    %c3_80 = arith.constant 3 : index
    %c0_81 = arith.constant 0 : index
    %197 = memref.load %arg3[%c3_80, %c0_81] : memref<6x4xf32, #tpu.memory_space<smem>>
    %198 = vector.broadcast %197 : f32 to vector<8x8xf32>
    %199 = arith.select %182, %198, %196 : vector<8x8xi1>, vector<8x8xf32>
    %c4_82 = arith.constant 4 : index
    %c0_83 = arith.constant 0 : index
    %200 = memref.load %arg3[%c4_82, %c0_83] : memref<6x4xf32, #tpu.memory_space<smem>>
    %201 = vector.broadcast %200 : f32 to vector<8x8xf32>
    %202 = arith.select %184, %201, %199 : vector<8x8xi1>, vector<8x8xf32>
    %c5_84 = arith.constant 5 : index
    %c0_85 = arith.constant 0 : index
    %203 = memref.load %arg3[%c5_84, %c0_85] : memref<6x4xf32, #tpu.memory_space<smem>>
    %204 = vector.broadcast %203 : f32 to vector<8x8xf32>
    %205 = arith.select %186, %204, %202 : vector<8x8xi1>, vector<8x8xf32>
    %206 = vector.shape_cast %205 : vector<8x8xf32> to vector<1x8x8xf32>
    %c0_86 = arith.constant 0 : index
    %c1_87 = arith.constant 1 : index
    %207 = memref.load %arg3[%c0_86, %c1_87] : memref<6x4xf32, #tpu.memory_space<smem>>
    %cst_88 = arith.constant 0.000000e+00 : f32
    %208 = vector.broadcast %cst_88 : f32 to vector<8x8xf32>
    %209 = vector.broadcast %207 : f32 to vector<8x8xf32>
    %210 = arith.select %176, %209, %208 : vector<8x8xi1>, vector<8x8xf32>
    %c1_89 = arith.constant 1 : index
    %c1_90 = arith.constant 1 : index
    %211 = memref.load %arg3[%c1_89, %c1_90] : memref<6x4xf32, #tpu.memory_space<smem>>
    %212 = vector.broadcast %211 : f32 to vector<8x8xf32>
    %213 = arith.select %178, %212, %210 : vector<8x8xi1>, vector<8x8xf32>
    %c2_91 = arith.constant 2 : index
    %c1_92 = arith.constant 1 : index
    %214 = memref.load %arg3[%c2_91, %c1_92] : memref<6x4xf32, #tpu.memory_space<smem>>
    %215 = vector.broadcast %214 : f32 to vector<8x8xf32>
    %216 = arith.select %180, %215, %213 : vector<8x8xi1>, vector<8x8xf32>
    %c3_93 = arith.constant 3 : index
    %c1_94 = arith.constant 1 : index
    %217 = memref.load %arg3[%c3_93, %c1_94] : memref<6x4xf32, #tpu.memory_space<smem>>
    %218 = vector.broadcast %217 : f32 to vector<8x8xf32>
    %219 = arith.select %182, %218, %216 : vector<8x8xi1>, vector<8x8xf32>
    %c4_95 = arith.constant 4 : index
    %c1_96 = arith.constant 1 : index
    %220 = memref.load %arg3[%c4_95, %c1_96] : memref<6x4xf32, #tpu.memory_space<smem>>
    %221 = vector.broadcast %220 : f32 to vector<8x8xf32>
    %222 = arith.select %184, %221, %219 : vector<8x8xi1>, vector<8x8xf32>
    %c5_97 = arith.constant 5 : index
    %c1_98 = arith.constant 1 : index
    %223 = memref.load %arg3[%c5_97, %c1_98] : memref<6x4xf32, #tpu.memory_space<smem>>
    %224 = vector.broadcast %223 : f32 to vector<8x8xf32>
    %225 = arith.select %186, %224, %222 : vector<8x8xi1>, vector<8x8xf32>
    %226 = vector.shape_cast %225 : vector<8x8xf32> to vector<1x8x8xf32>
    %c0_99 = arith.constant 0 : index
    %c2_100 = arith.constant 2 : index
    %227 = memref.load %arg3[%c0_99, %c2_100] : memref<6x4xf32, #tpu.memory_space<smem>>
    %cst_101 = arith.constant 0.000000e+00 : f32
    %228 = vector.broadcast %cst_101 : f32 to vector<8x8xf32>
    %229 = vector.broadcast %227 : f32 to vector<8x8xf32>
    %230 = arith.select %176, %229, %228 : vector<8x8xi1>, vector<8x8xf32>
    %c1_102 = arith.constant 1 : index
    %c2_103 = arith.constant 2 : index
    %231 = memref.load %arg3[%c1_102, %c2_103] : memref<6x4xf32, #tpu.memory_space<smem>>
    %232 = vector.broadcast %231 : f32 to vector<8x8xf32>
    %233 = arith.select %178, %232, %230 : vector<8x8xi1>, vector<8x8xf32>
    %c2_104 = arith.constant 2 : index
    %c2_105 = arith.constant 2 : index
    %234 = memref.load %arg3[%c2_104, %c2_105] : memref<6x4xf32, #tpu.memory_space<smem>>
    %235 = vector.broadcast %234 : f32 to vector<8x8xf32>
    %236 = arith.select %180, %235, %233 : vector<8x8xi1>, vector<8x8xf32>
    %c3_106 = arith.constant 3 : index
    %c2_107 = arith.constant 2 : index
    %237 = memref.load %arg3[%c3_106, %c2_107] : memref<6x4xf32, #tpu.memory_space<smem>>
    %238 = vector.broadcast %237 : f32 to vector<8x8xf32>
    %239 = arith.select %182, %238, %236 : vector<8x8xi1>, vector<8x8xf32>
    %c4_108 = arith.constant 4 : index
    %c2_109 = arith.constant 2 : index
    %240 = memref.load %arg3[%c4_108, %c2_109] : memref<6x4xf32, #tpu.memory_space<smem>>
    %241 = vector.broadcast %240 : f32 to vector<8x8xf32>
    %242 = arith.select %184, %241, %239 : vector<8x8xi1>, vector<8x8xf32>
    %c5_110 = arith.constant 5 : index
    %c2_111 = arith.constant 2 : index
    %243 = memref.load %arg3[%c5_110, %c2_111] : memref<6x4xf32, #tpu.memory_space<smem>>
    %244 = vector.broadcast %243 : f32 to vector<8x8xf32>
    %245 = arith.select %186, %244, %242 : vector<8x8xi1>, vector<8x8xf32>
    %246 = vector.shape_cast %245 : vector<8x8xf32> to vector<1x8x8xf32>
    %c0_112 = arith.constant 0 : index
    %c3_113 = arith.constant 3 : index
    %247 = memref.load %arg3[%c0_112, %c3_113] : memref<6x4xf32, #tpu.memory_space<smem>>
    %cst_114 = arith.constant 0.000000e+00 : f32
    %248 = vector.broadcast %cst_114 : f32 to vector<8x8xf32>
    %249 = vector.broadcast %247 : f32 to vector<8x8xf32>
    %250 = arith.select %176, %249, %248 : vector<8x8xi1>, vector<8x8xf32>
    %c1_115 = arith.constant 1 : index
    %c3_116 = arith.constant 3 : index
    %251 = memref.load %arg3[%c1_115, %c3_116] : memref<6x4xf32, #tpu.memory_space<smem>>
    %252 = vector.broadcast %251 : f32 to vector<8x8xf32>
    %253 = arith.select %178, %252, %250 : vector<8x8xi1>, vector<8x8xf32>
    %c2_117 = arith.constant 2 : index
    %c3_118 = arith.constant 3 : index
    %254 = memref.load %arg3[%c2_117, %c3_118] : memref<6x4xf32, #tpu.memory_space<smem>>
    %255 = vector.broadcast %254 : f32 to vector<8x8xf32>
    %256 = arith.select %180, %255, %253 : vector<8x8xi1>, vector<8x8xf32>
    %c3_119 = arith.constant 3 : index
    %c3_120 = arith.constant 3 : index
    %257 = memref.load %arg3[%c3_119, %c3_120] : memref<6x4xf32, #tpu.memory_space<smem>>
    %258 = vector.broadcast %257 : f32 to vector<8x8xf32>
    %259 = arith.select %182, %258, %256 : vector<8x8xi1>, vector<8x8xf32>
    %c4_121 = arith.constant 4 : index
    %c3_122 = arith.constant 3 : index
    %260 = memref.load %arg3[%c4_121, %c3_122] : memref<6x4xf32, #tpu.memory_space<smem>>
    %261 = vector.broadcast %260 : f32 to vector<8x8xf32>
    %262 = arith.select %184, %261, %259 : vector<8x8xi1>, vector<8x8xf32>
    %c5_123 = arith.constant 5 : index
    %c3_124 = arith.constant 3 : index
    %263 = memref.load %arg3[%c5_123, %c3_124] : memref<6x4xf32, #tpu.memory_space<smem>>
    %264 = vector.broadcast %263 : f32 to vector<8x8xf32>
    %265 = arith.select %186, %264, %262 : vector<8x8xi1>, vector<8x8xf32>
    %266 = vector.shape_cast %265 : vector<8x8xf32> to vector<1x8x8xf32>
    %267 = tpu.concatenate %206, %226, %246, %266 in 0 : vector<1x8x8xf32>, vector<1x8x8xf32>, vector<1x8x8xf32>, vector<1x8x8xf32> -> vector<4x8x8xf32>
    %cst_125 = arith.constant dense<0xFF800000> : vector<4x8xf32>
    %268 = vector.multi_reduction <maximumf>, %267, %cst_125 [2] : vector<4x8x8xf32> to vector<4x8xf32>
    %269 = vector.shape_cast %268 : vector<4x8xf32> to vector<4x8x1xf32>
    %270 = vector.broadcast %269 : vector<4x8x1xf32> to vector<4x8x8xf32>
    %271 = arith.subf %267, %270 : vector<4x8x8xf32>
    %272 = math.exp %271 : vector<4x8x8xf32>
    %cst_126 = arith.constant dense<0.000000e+00> : vector<4x8xf32>
    %273 = vector.multi_reduction <add>, %272, %cst_126 [2] : vector<4x8x8xf32> to vector<4x8xf32>
    %274 = vector.shape_cast %273 : vector<4x8xf32> to vector<4x8x1xf32>
    %275 = vector.broadcast %274 : vector<4x8x1xf32> to vector<4x8x8xf32>
    %276 = arith.divf %272, %275 : vector<4x8x8xf32>
    %c1_127 = arith.constant 1 : index
    %c0_128 = arith.constant 0 : index
    %c0_129 = arith.constant 0 : index
    %277 = vector.load %arg2[%c1_127, %c0_128, %c0_129] : memref<2x8x32xf32, #tpu.memory_space<vmem>>, vector<1x8x32xf32>
    %278 = vector.shape_cast %277 : vector<1x8x32xf32> to vector<8x32xf32>
    %279 = vector.extract_strided_slice %0 {offsets = [0, 0, 0], sizes = [1, 8, 4], strides = [1, 1, 1]} : vector<2x8x4xf32> to vector<1x8x4xf32>
    %280 = vector.shape_cast %279 : vector<1x8x4xf32> to vector<8x4xf32>
    %281 = vector.extract_strided_slice %276 {offsets = [0, 0, 0], sizes = [1, 8, 8], strides = [1, 1, 1]} : vector<4x8x8xf32> to vector<1x8x8xf32>
    %282 = vector.shape_cast %281 : vector<1x8x8xf32> to vector<8x8xf32>
    %283 = vector.extract_strided_slice %280 {offsets = [0, 0], sizes = [8, 1], strides = [1, 1]} : vector<8x4xf32> to vector<8x1xf32>
    %284 = vector.broadcast %283 : vector<8x1xf32> to vector<8x8xf32>
    %285 = arith.mulf %282, %284 : vector<8x8xf32>
    %286 = vector.extract_strided_slice %276 {offsets = [1, 0, 0], sizes = [1, 8, 8], strides = [1, 1, 1]} : vector<4x8x8xf32> to vector<1x8x8xf32>
    %287 = vector.shape_cast %286 : vector<1x8x8xf32> to vector<8x8xf32>
    %288 = vector.extract_strided_slice %280 {offsets = [0, 1], sizes = [8, 1], strides = [1, 1]} : vector<8x4xf32> to vector<8x1xf32>
    %289 = vector.broadcast %288 : vector<8x1xf32> to vector<8x8xf32>
    %290 = arith.mulf %287, %289 : vector<8x8xf32>
    %291 = arith.addf %285, %290 : vector<8x8xf32>
    %292 = vector.extract_strided_slice %276 {offsets = [2, 0, 0], sizes = [1, 8, 8], strides = [1, 1, 1]} : vector<4x8x8xf32> to vector<1x8x8xf32>
    %293 = vector.shape_cast %292 : vector<1x8x8xf32> to vector<8x8xf32>
    %294 = vector.extract_strided_slice %280 {offsets = [0, 2], sizes = [8, 1], strides = [1, 1]} : vector<8x4xf32> to vector<8x1xf32>
    %295 = vector.broadcast %294 : vector<8x1xf32> to vector<8x8xf32>
    %296 = arith.mulf %293, %295 : vector<8x8xf32>
    %297 = arith.addf %291, %296 : vector<8x8xf32>
    %298 = vector.extract_strided_slice %276 {offsets = [3, 0, 0], sizes = [1, 8, 8], strides = [1, 1, 1]} : vector<4x8x8xf32> to vector<1x8x8xf32>
    %299 = vector.shape_cast %298 : vector<1x8x8xf32> to vector<8x8xf32>
    %300 = vector.extract_strided_slice %280 {offsets = [0, 3], sizes = [8, 1], strides = [1, 1]} : vector<8x4xf32> to vector<8x1xf32>
    %301 = vector.broadcast %300 : vector<8x1xf32> to vector<8x8xf32>
    %302 = arith.mulf %299, %301 : vector<8x8xf32>
    %303 = arith.addf %297, %302 : vector<8x8xf32>
    %cst_130 = arith.constant dense<0.000000e+00> : vector<8x32xf32>
    %304 = tpu.matmul %303, %278, %cst_130 {dimension_numbers = #tpu.dot_dimension_numbers<[1], [0], [0], [1], [0, 0, 1, 1], [], []>} : vector<8x8xf32>, vector<8x32xf32>, vector<8x32xf32> -> vector<8x32xf32>
    %305 = vector.extract_strided_slice %1 {offsets = [0, 0, 0], sizes = [1, 8, 1], strides = [1, 1, 1]} : vector<2x8x1xf32> to vector<1x8x1xf32>
    %306 = vector.shape_cast %305 : vector<1x8x1xf32> to vector<8x1xf32>
    %307 = vector.broadcast %306 : vector<8x1xf32> to vector<8x32xf32>
    %308 = arith.addf %304, %307 : vector<8x32xf32>
    %309 = math.tanh %308 : vector<8x32xf32>
    %310 = vector.extract_strided_slice %0 {offsets = [1, 0, 0], sizes = [1, 8, 4], strides = [1, 1, 1]} : vector<2x8x4xf32> to vector<1x8x4xf32>
    %311 = vector.shape_cast %310 : vector<1x8x4xf32> to vector<8x4xf32>
    %312 = vector.extract_strided_slice %276 {offsets = [0, 0, 0], sizes = [1, 8, 8], strides = [1, 1, 1]} : vector<4x8x8xf32> to vector<1x8x8xf32>
    %313 = vector.shape_cast %312 : vector<1x8x8xf32> to vector<8x8xf32>
    %314 = vector.extract_strided_slice %311 {offsets = [0, 0], sizes = [8, 1], strides = [1, 1]} : vector<8x4xf32> to vector<8x1xf32>
    %315 = vector.broadcast %314 : vector<8x1xf32> to vector<8x8xf32>
    %316 = arith.mulf %313, %315 : vector<8x8xf32>
    %317 = vector.extract_strided_slice %276 {offsets = [1, 0, 0], sizes = [1, 8, 8], strides = [1, 1, 1]} : vector<4x8x8xf32> to vector<1x8x8xf32>
    %318 = vector.shape_cast %317 : vector<1x8x8xf32> to vector<8x8xf32>
    %319 = vector.extract_strided_slice %311 {offsets = [0, 1], sizes = [8, 1], strides = [1, 1]} : vector<8x4xf32> to vector<8x1xf32>
    %320 = vector.broadcast %319 : vector<8x1xf32> to vector<8x8xf32>
    %321 = arith.mulf %318, %320 : vector<8x8xf32>
    %322 = arith.addf %316, %321 : vector<8x8xf32>
    %323 = vector.extract_strided_slice %276 {offsets = [2, 0, 0], sizes = [1, 8, 8], strides = [1, 1, 1]} : vector<4x8x8xf32> to vector<1x8x8xf32>
    %324 = vector.shape_cast %323 : vector<1x8x8xf32> to vector<8x8xf32>
    %325 = vector.extract_strided_slice %311 {offsets = [0, 2], sizes = [8, 1], strides = [1, 1]} : vector<8x4xf32> to vector<8x1xf32>
    %326 = vector.broadcast %325 : vector<8x1xf32> to vector<8x8xf32>
    %327 = arith.mulf %324, %326 : vector<8x8xf32>
    %328 = arith.addf %322, %327 : vector<8x8xf32>
    %329 = vector.extract_strided_slice %276 {offsets = [3, 0, 0], sizes = [1, 8, 8], strides = [1, 1, 1]} : vector<4x8x8xf32> to vector<1x8x8xf32>
    %330 = vector.shape_cast %329 : vector<1x8x8xf32> to vector<8x8xf32>
    %331 = vector.extract_strided_slice %311 {offsets = [0, 3], sizes = [8, 1], strides = [1, 1]} : vector<8x4xf32> to vector<8x1xf32>
    %332 = vector.broadcast %331 : vector<8x1xf32> to vector<8x8xf32>
    %333 = arith.mulf %330, %332 : vector<8x8xf32>
    %334 = arith.addf %328, %333 : vector<8x8xf32>
    %cst_131 = arith.constant dense<0.000000e+00> : vector<8x32xf32>
    %335 = tpu.matmul %334, %309, %cst_131 {dimension_numbers = #tpu.dot_dimension_numbers<[1], [0], [0], [1], [0, 0, 1, 1], [], []>} : vector<8x8xf32>, vector<8x32xf32>, vector<8x32xf32> -> vector<8x32xf32>
    %336 = vector.extract_strided_slice %1 {offsets = [1, 0, 0], sizes = [1, 8, 1], strides = [1, 1, 1]} : vector<2x8x1xf32> to vector<1x8x1xf32>
    %337 = vector.shape_cast %336 : vector<1x8x1xf32> to vector<8x1xf32>
    %338 = vector.broadcast %337 : vector<8x1xf32> to vector<8x32xf32>
    %339 = arith.addf %335, %338 : vector<8x32xf32>
    %340 = math.tanh %339 : vector<8x32xf32>
    %c1_132 = arith.constant 1 : index
    %c0_133 = arith.constant 0 : index
    %c0_134 = arith.constant 0 : index
    %341 = vector.load %arg6[%c1_132, %c0_133, %c0_134] : memref<2x8x32xf32, #tpu.memory_space<vmem>>, vector<1x8x32xf32>
    %342 = vector.shape_cast %341 : vector<1x8x32xf32> to vector<8x32xf32>
    %343 = vector.shape_cast %340 : vector<8x32xf32> to vector<1x8x32xf32>
    tpu.vector_store %arg6[%c1_132, %c0_133, %c0_134], %343 {strides = array<i32>} : memref<2x8x32xf32, #tpu.memory_space<vmem>>, vector<1x8x32xf32>,
    return
  }
  func.func @transform_0(%arg0: i32) -> (i32, i32, i32) {
    %c0_i32 = arith.constant 0 : i32
    %c0_i32_0 = arith.constant 0 : i32
    %c0_i32_1 = arith.constant 0 : i32
    return %arg0, %c0_i32, %c0_i32_0 : i32, i32, i32
  }
  func.func @transform_1(%arg0: i32) -> (i32, i32, i32) {
    %c0_i32 = arith.constant 0 : i32
    %c0_i32_0 = arith.constant 0 : i32
    %c0_i32_1 = arith.constant 0 : i32
    return %arg0, %c0_i32, %c0_i32_0 : i32, i32, i32
  }
  func.func @transform_2(%arg0: i32) -> (i32, i32) {
    %c0_i32 = arith.constant 0 : i32
    %c0_i32_0 = arith.constant 0 : i32
    %c0_i32_1 = arith.constant 0 : i32
    return %c0_i32, %c0_i32_0 : i32, i32
  }
  func.func @transform_3(%arg0: i32) -> (i32, i32, i32) {
    %c0_i32 = arith.constant 0 : i32
    %c0_i32_0 = arith.constant 0 : i32
    %c0_i32_1 = arith.constant 0 : i32
    %c0_i32_2 = arith.constant 0 : i32
    return %c0_i32, %c0_i32_0, %c0_i32_1 : i32, i32, i32
  }
  func.func @transform_4(%arg0: i32) -> (i32, i32, i32) {
    %c0_i32 = arith.constant 0 : i32
    %c0_i32_0 = arith.constant 0 : i32
    %c0_i32_1 = arith.constant 0 : i32
    %c0_i32_2 = arith.constant 0 : i32
    return %c0_i32, %c0_i32_0, %c0_i32_1 : i32, i32, i32
  }
  func.func @transform_5(%arg0: i32) -> (i32, i32, i32) {
    %c0_i32 = arith.constant 0 : i32
    %c0_i32_0 = arith.constant 0 : i32
    %c0_i32_1 = arith.constant 0 : i32
    return %arg0, %c0_i32, %c0_i32_0 : i32, i32, i32
  }
}

</mosaic_0001>

<bundles_post_ra>
// kernel: tpu_custom_call.1
= control target key start
LH: loop header
LB: loop body
LE: loop exit
PB: predicated region body
PF: predicated region fallthrough
CT: control target
= control target key end

     0   :  { %10 = vsyncpa [#allocation4], 0  ;;  %s1183_s0 = inlined_call_operand.vmem [shape: s32[2,8,8], index: 0, kind: input, shape index: {}]   ;;  %s1184_s1 = inlined_call_operand.vmem [shape: f32[2,8,32], index: 1, kind: input, shape index: {}]   ;;  %s1185_s2 = inlined_call_operand.vmem [shape: f32[6,4], index: 2, kind: input, shape index: {}]   ;;  %s1186_s3 = inlined_call_operand.vmem [shape: f32[2,8,4], index: 3, kind: input, shape index: {}]   ;;  %s1187_s4 = inlined_call_operand.vmem [shape: f32[2,8,1], index: 4, kind: input, shape index: {}]   ;;  %s1188_s5 = inlined_call_operand.hbm [shape: f32[2,8,32], index: 5, kind: output, shape index: {}]  }
   0x1   :  { %11 = vsyncpa [#allocation3], 0  ;;  %s22_s20 = sshll.u32 %s1185_s2, 4  ;;  %s23_s20 = int_to_ptr.vmem [resolvable:$true] %s22_s20 }
   0x2   :  { %s816_s21 = scalar_lea.vmem %s23_s20, 128  ;;  %p821_p1 = scmp.lt.s32.totalorder %s23_s20, %s23_s20 }
   0x3   :  { %p817_p0 = scmp.ne.s32.totalorder %s23_s20, %s816_s21  ;;  %p822_p2 = scmp.lt.s32.totalorder %s816_s21, %s816_s21 }
   0x5   :  { %p823_p3 = por %p822_p2, %p821_p1 }
   0x7   :  { %p824_p4 = pnand %p823_p3, %p817_p0 }
   0x9   :  { %827 = shalt.err (!%p824_p4)
}
   0xa   :  { %s852_s22 = smov [#allocation2]  }
   0xb   :  { %25 = dma.vmem_to_smem %s23_s20, 128, %s852_s22, [#allocation4]  }
   0xc   :  { %848 = dma.done.wait [#allocation4], 128  }
   0xd   :  { %849 = vsyncadd [#allocation4], 4294967168 }
   0xe   :  { %33 = sfence }
   0xf   :  { %s45_s23 = sld [smem:[#allocation2]]  ;;  %v898_v0 = vld [vmem:[%s1183_s0] sm:$0xff]  ;;  %v907_v1 = vld [vmem:[%s1183_s0 + $0x8] sm:$0xff]  ;;  %vm117_vm8 = vcmask 64512   ;;  %vm858_vm13 = vmmov 0   ;;  %vm369_vm14 = vcmask 261120  }
  0x10   :  { %s900_s2 = sld [smem:[#allocation2 + $0x80]]  ;;  %vm39_vm0 = vcmp.eq.s32.totalorder %v898_v0, 0  ;;  %vm40_vm1 = vcmp.eq.s32.totalorder %v898_v0, 1  ;;  %vm373_vm2 = vcmp.eq.s32.totalorder %v907_v1, 0  ;;  %vm41_vm3 = vcmp.eq.s32.totalorder %v898_v0, 2 }
  0x11   :  { %s902_s26 = sld [smem:[#allocation2 + $0x100]]  ;;  %vm42_vm4 = vcmp.eq.s32.totalorder %v898_v0, 3  ;;  %vm43_vm5 = vcmp.eq.s32.totalorder %v898_v0, 4  ;;  %vm374_vm6 = vcmp.eq.s32.totalorder %v907_v1, 1  ;;  %vm44_vm7 = vcmp.eq.s32.totalorder %v898_v0, 5 }
  0x12   :  { %s909_s29 = sld [smem:[#allocation2 + $0x180]]  ;;  %vm375_vm9 = vcmp.eq.s32.totalorder %v907_v1, 2  ;;  %vm376_vm10 = vcmp.eq.s32.totalorder %v907_v1, 3  ;;  %vm377_vm11 = vcmp.eq.s32.totalorder %v907_v1, 4  ;;  %vm378_vm12 = vcmp.eq.s32.totalorder %v907_v1, 5 }
  0x13   :  { %s912_s30 = sld [smem:[#allocation2 + $0x200]] }
  0x14   :  { %s915_s6 = sld [smem:[#allocation2 + $0x280]] }
  0x15   :  { %v46_v2 = vstv %s45_s23  ;;  %s919_s7 = sld [smem:[#allocation2 + $0x2]] }
  0x16   :  { %v47_v3 = vsel %vm39_vm0, %v46_v2, 0.0  ;;  %v49_v4 = vstv %s900_s2  ;;  %s926_s0 = sld [smem:[#allocation2 + $0x82]]  ;;  %v381_v7 = vsel %vm373_vm2, %v46_v2, 0.0 }
  0x17   :  { %v50_v5 = vsel %vm40_vm1, %v49_v4, %v47_v3  ;;  %v52_v6 = vstv %s902_s26  ;;  %s931_s8 = sld [smem:[#allocation2 + $0x102]]  ;;  %v384_v14 = vsel %vm374_vm6, %v49_v4, %v381_v7 }
  0x18   :  { %v53_v8 = vsel %vm41_vm3, %v52_v6, %v50_v5  ;;  %v55_v9 = vstv %s909_s29  ;;  %s940_s9 = sld [smem:[#allocation2 + $0x182]]  ;;  %v387_v22 = vsel %vm375_vm9, %v52_v6, %v384_v14 }
  0x19   :  { %v56_v10 = vsel %vm42_vm4, %v55_v9, %v53_v8  ;;  %v58_v11 = vstv %s912_s30  ;;  %s945_s10 = sld [smem:[#allocation2 + $0x202]]  ;;  %v390_v31 = vsel %vm376_vm10, %v55_v9, %v387_v22 }
  0x1a   :  { %v59_v12 = vsel %vm43_vm5, %v58_v11, %v56_v10  ;;  %v61_v13 = vstv %s915_s6  ;;  %s950_s11 = sld [smem:[#allocation2 + $0x282]]  ;;  %v393_v41 = vsel %vm377_vm11, %v58_v11, %v390_v31 }
  0x1b   :  { %v957_v15 = vsel %vm44_vm7, %v61_v13, %v59_v12  ;;  %v82_v16 = vstv %s919_s7  ;;  %s960_s12 = sld [smem:[#allocation2 + $0x1]]  ;;  %v396_v51 = vsel %vm378_vm12, %v61_v13, %v393_v41 }
  0x1c   :  { %v118_v17 = vsel %vm117_vm8, %v957_v15, -inf  ;;  %v83_v18 = vsel %vm39_vm0, %v82_v16, 0.0  ;;  %v85_v19 = vstv %s926_s0  ;;  %s967_s13 = sld [smem:[#allocation2 + $0x81]]  ;;  %v417_v23 = vsel %vm373_vm2, %v82_v16, 0.0 }
  0x1d   :  { %119 = vmax.xlane.f32.xlu0 %v118_v17  ;;  %v86_v20 = vsel %vm40_vm1, %v85_v19, %v83_v18  ;;  %v88_v21 = vstv %s931_s8  ;;  %s973_s14 = sld [smem:[#allocation2 + $0x101]]  ;;  %v420_v26 = vsel %vm374_vm6, %v85_v19, %v417_v23  ;;  %v451_v61 = vsel %vm117_vm8, %v396_v51, -inf }
  0x1e   :  { %v89_v24 = vsel %vm41_vm3, %v88_v21, %v86_v20  ;;  %v91_v25 = vstv %s940_s9  ;;  %s982_s15 = sld [smem:[#allocation2 + $0x181]]  ;;  %v423_v34 = vsel %vm375_vm9, %v88_v21, %v420_v26  ;;  %v853_v20 = vmov 1  }
  0x1f   :  { %v92_v27 = vsel %vm42_vm4, %v91_v25, %v89_v24  ;;  %v94_v28 = vstv %s945_s10  ;;  %s989_s16 = sld [smem:[#allocation2 + $0x201]]  ;;  %v426_v48 = vsel %vm376_vm10, %v91_v25, %v423_v34  ;;  %769 = vset.pattern.permute.xlu1 %v853_v20  ;;  %v854_v21 = vmov 0  }
  0x20   :  { %v95_v29 = vsel %vm43_vm5, %v94_v28, %v92_v27  ;;  %v97_v30 = vstv %s950_s11  ;;  %s994_s17 = sld [smem:[#allocation2 + $0x281]]  ;;  %v429_v58 = vsel %vm377_vm11, %v94_v28, %v426_v48  ;;  %768 = vset.pattern.permute.xlu0 %v854_v21 }
  0x21   :  { %v1001_v32 = vsel %vm44_vm7, %v97_v30, %v95_v29  ;;  %v64_v33 = vstv %s960_s12  ;;  %s1004_s18 = sld [smem:[#allocation2 + $0x3]]  ;;  %v432_v7 = vsel %vm378_vm12, %v97_v30, %v429_v58  ;;  %v856_v58 = vmov 3  }
  0x22   :  { %v124_v35 = vsel %vm117_vm8, %v1001_v32, -inf  ;;  %v65_v36 = vsel %vm39_vm0, %v64_v33, 0.0  ;;  %v67_v37 = vstv %s967_s13  ;;  %s1014_s19 = sld [smem:[#allocation2 + $0x83]]  ;;  %v399_v38 = vsel %vm373_vm2, %v64_v33, 0.0 }
  0x23   :  { %125 = vmax.xlane.f32.xlu1 %v124_v35  ;;  %v68_v39 = vsel %vm40_vm1, %v67_v37, %v65_v36  ;;  %v70_v40 = vstv %s973_s14  ;;  %s1021_s20 = sld [smem:[#allocation2 + $0x103]]  ;;  %v402_v42 = vsel %vm374_vm6, %v67_v37, %v399_v38  ;;  %v457_v16 = vsel %vm117_vm8, %v432_v7, -inf }
  0x24   :  { %v71_v43 = vsel %vm41_vm3, %v70_v40, %v68_v39  ;;  %v73_v44 = vstv %s982_s15  ;;  %s1030_s21 = sld [smem:[#allocation2 + $0x183]]  ;;  %v405_v45 = vsel %vm375_vm9, %v70_v40, %v402_v42 }
  0x25   :  { %v74_v46 = vsel %vm42_vm4, %v73_v44, %v71_v43  ;;  %v76_v47 = vstv %s989_s16  ;;  %s1037_s22 = sld [smem:[#allocation2 + $0x203]]  ;;  %v408_v54 = vsel %vm376_vm10, %v73_v44, %v405_v45 }
  0x26   :  { %v77_v49 = vsel %vm43_vm5, %v76_v47, %v74_v46  ;;  %v79_v50 = vstv %s994_s17  ;;  %s1044_s23 = sld [smem:[#allocation2 + $0x283]]  ;;  %v411_v3 = vsel %vm377_vm11, %v76_v47, %v408_v54 }
  0x27   :  { %v80_v52 = vsel %vm44_vm7, %v79_v50, %v77_v49  ;;  %v100_v53 = vstv %s1004_s18  ;;  %v414_v13 = vsel %vm378_vm12, %v79_v50, %v411_v3  ;;  %v162_v3 = vld [vmem:[%s1184_s1] sm:$0xff] }
  0x28   :  { %v121_v55 = vsel %vm117_vm8, %v80_v52, -inf  ;;  %v101_v56 = vsel %vm39_vm0, %v100_v53, 0.0  ;;  %v103_v57 = vstv %s1014_s19  ;;  %v435_v62 = vsel %vm373_vm2, %v100_v53, 0.0 }
  0x29   :  { %122 = vmax.xlane.f32.xlu0 %v121_v55  ;;  %v104_v59 = vsel %vm40_vm1, %v103_v57, %v101_v56  ;;  %v106_v60 = vstv %s1021_s20  ;;  %v438_v4 = vsel %vm374_vm6, %v103_v57, %v435_v62  ;;  %v454_v18 = vsel %vm117_vm8, %v414_v13, -inf  ;;  %v34_v55 = vld [vmem:[%s1186_s3] sm:$0xff]  ;;  %v37_v57 = vld [vmem:[%s1187_s4 + $0x8] sm:$0xff] }
  0x2a   :  { %v107_v63 = vsel %vm41_vm3, %v106_v60, %v104_v59  ;;  %v109_v2 = vstv %s1030_s21  ;;  %v441_v8 = vsel %vm375_vm9, %v106_v60, %v438_v4  ;;  %v855_v56 = vmov 2   ;;  %v36_v4 = vld [vmem:[%s1187_s4] sm:$0xff] }
  0x2b   :  { %v110_v5 = vsel %vm42_vm4, %v109_v2, %v107_v63  ;;  %v112_v6 = vstv %s1037_s22  ;;  %v444_v11 = vsel %vm376_vm10, %v109_v2, %v441_v8  ;;  %v857_v2 = vmov 0.0  }
  0x2c   :  { %v113_v9 = vsel %vm43_vm5, %v112_v6, %v110_v5  ;;  %v115_v10 = vstv %s1044_s23  ;;  %v447_v17 = vsel %vm377_vm11, %v112_v6, %v444_v11  ;;  %738 = vmatprep.subr.mxu0 %v857_v2  ;;  %743 = vmatprep.subr.mxu1 %v857_v2  ;;  %v35_v5 = vld [vmem:[%s1186_s3 + $0x8] sm:$0xff] }
  0x2d   :  { %v116_v12 = vsel %vm44_vm7, %v115_v10, %v113_v9  ;;  %452 = vmax.xlane.f32.xlu0 %v451_v61  ;;  %v1095_v19 = vsel %vm378_vm12, %v115_v10, %v447_v17  ;;  %739 = vmatpush3.msra.mxu0 %v162_v3 }
  0x2e   :  { %v127_v14 = vsel %vm117_vm8, %v116_v12, -inf  ;;  %v460_v0 = vsel %vm117_vm8, %v1095_v19, -inf  ;;  %740 = vmatprep.mubr.msk.f32.mxu0 %vm858_vm13, %v857_v2  ;;  %748 = vmatprep.subr.mxu0 %v857_v2 }
  0x2f   :  { %128 = vmax.xlane.f32.xlu1 %v127_v14  ;;  %745 = vmatprep.mubr.msk.f32.mxu1 %vm858_vm13, %v857_v2 }
  0x31   :  { %458 = vmax.xlane.f32.xlu0 %v457_v16 }
  0x33   :  { %455 = vmax.xlane.f32.xlu1 %v454_v18 }
  0x37   :  { %461 = vmax.xlane.f32.xlu1 %v460_v0 }
  0xa6   :  { %v120_v22 = vpop.xlane.xlu0 %119 }
  0xa7   :  { %v130_v23 = vsub.f32 %v957_v15, %v120_v22 }
  0xa9   :  { %v134_v24 = vmul.f32 1.442695, %v130_v23 }
  0xab   :  { %776 = vpow2.f32 %v134_v24 }
  0xac   :  { %v126_v25 = vpop.xlane.xlu1 %125 }
  0xad   :  { %v132_v1 = vsub.f32 %v1001_v32, %v126_v25 }
  0xaf   :  { %v138_v26 = vmul.f32 1.442695, %v132_v1 }
  0xb1   :  { %778 = vpow2.f32 %v138_v26 }
  0xb2   :  { %v123_v27 = vpop.xlane.xlu0 %122 }
  0xb3   :  { %v131_v28 = vsub.f32 %v80_v52, %v123_v27 }
  0xb5   :  { %v136_v29 = vmul.f32 1.442695, %v131_v28 }
  0xb6   :  { %v453_v30 = vpop.xlane.xlu0 %452 }
  0xb7   :  { %780 = vpow2.f32 %v136_v29  ;;  %v463_v31 = vsub.f32 %v396_v51, %v453_v30 }
  0xb8   :  { %v1103_v33 = vpop.eup %776  ;;  %v129_v34 = vpop.xlane.xlu1 %128 }
  0xb9   :  { %v133_v35 = vsub.f32 %v116_v12, %v129_v34  ;;  %v467_v36 = vmul.f32 1.442695, %v463_v31  ;;  %v142_v15 = vsel %vm117_vm8, %v1103_v33, 0.0 }
  0xba   :  { %v459_v37 = vpop.xlane.xlu0 %458  ;;  %143 = vadd.xlane.f32.xlu0 %v142_v15  ;;  %v727_v15 = vld [vmem:[%s1184_s1 + $0x8] sm:$0xff]  ;;  %s859_s1 = smov [#allocation5]  }
  0xbb   :  { %v140_v38 = vmul.f32 1.442695, %v133_v35  ;;  %782 = vpow2.f32 %v467_v36  ;;  %v465_v32 = vsub.f32 %v432_v7, %v459_v37  ;;  %s666_s0 = sshll.u32 %s859_s1, 4  ;;  %s667_s0 = int_to_ptr.vmem [resolvable:$true] %s666_s0 }
  0xbc   :  { %v456_v39 = vpop.xlane.xlu1 %455  ;;  %s828_s8 = scalar_lea.vmem %s667_s0, 256  ;;  %p833_p6 = scmp.lt.s32.totalorder %s667_s0, %s667_s0 }
  0xbd   :  { %784 = vpow2.f32 %v140_v38  ;;  %v464_v40 = vsub.f32 %v414_v13, %v456_v39  ;;  %v471_v41 = vmul.f32 1.442695, %v465_v32  ;;  %p829_p5 = scmp.ne.s32.totalorder %s667_s0, %s828_s8  ;;  %p834_p7 = scmp.lt.s32.totalorder %s828_s8, %s828_s8 }
  0xbe   :  { %v1107_v42 = vpop.eup %778 }
  0xbf   :  { %v469_v43 = vmul.f32 1.442695, %v464_v40  ;;  %786 = vpow2.f32 %v471_v41  ;;  %v148_v44 = vsel %vm117_vm8, %v1107_v42, 0.0  ;;  %p835_p8 = por %p834_p7, %p833_p6 }
  0xc0   :  { %149 = vadd.xlane.f32.xlu0 %v148_v44  ;;  %v462_v59 = vpop.xlane.xlu1 %461 }
  0xc1   :  { %788 = vpow2.f32 %v469_v43  ;;  %v466_v60 = vsub.f32 %v1095_v19, %v462_v59  ;;  %p836_p9 = pnand %p835_p8, %p829_p5 }
  0xc3   :  { %v473_v61 = vmul.f32 1.442695, %v466_v60 }
  0xc4   :  { %v1111_v45 = vpop.eup %780 }
  0xc5   :  { %v145_v46 = vsel %vm117_vm8, %v1111_v45, 0.0  ;;  %790 = vpow2.f32 %v473_v61 }
  0xc6   :  { %146 = vadd.xlane.f32.xlu1 %v145_v46 }
  0xc8   :  { %v1115_v47 = vpop.eup %782 }
  0xc9   :  { %v475_v48 = vsel %vm117_vm8, %v1115_v47, 0.0 }
  0xca   :  { %v1119_v49 = vpop.eup %784  ;;  %476 = vadd.xlane.f32.xlu0 %v475_v48 }
  0xcb   :  { %v151_v50 = vsel %vm117_vm8, %v1119_v49, 0.0 }
  0xcc   :  { %v1123_v51 = vpop.eup %786  ;;  %152 = vadd.xlane.f32.xlu1 %v151_v50 }
  0xcd   :  { %v481_v52 = vsel %vm117_vm8, %v1123_v51, 0.0 }
  0xce   :  { %v1127_v53 = vpop.eup %788  ;;  %482 = vadd.xlane.f32.xlu0 %v481_v52 }
  0xcf   :  { %v478_v54 = vsel %vm117_vm8, %v1127_v53, 0.0 }
  0xd0   :  { %479 = vadd.xlane.f32.xlu1 %v478_v54 }
  0xd2   :  { %v1138_v62 = vpop.eup %790 }
  0xd3   :  { %v484_v63 = vsel %vm117_vm8, %v1138_v62, 0.0 }
  0xe1   :  { %170 = vperm.xlu1 %769, %v34_v55  }
  0xe4   :  { %165 = vperm.xlu0 %768, %v34_v55  }
  0xe5   :  { %770 = vset.pattern.permute.xlu1 %v855_v56 }
  0xe6   :  { %176 = vperm.xlu1 %770, %v34_v55  }
  0xe8   :  { %292 = vperm.xlu0 %768, %v37_v57  }
  0xea   :  { %771 = vset.pattern.permute.xlu1 %v856_v58 }
 0x10a   :  { %485 = vadd.xlane.f32.xlu1 %v484_v63 }
 0x11b   :  { %182 = vperm.xlu1 %771, %v34_v55  }
 0x11f   :  { %772 = vset.pattern.permute.xlu1 %v854_v21 }
 0x120   :  { %189 = vperm.xlu1 %772, %v36_v4  }
 0x124   :  { %268 = vperm.xlu1 %772, %v35_v5  }
 0x128   :  { %773 = vset.pattern.permute.xlu1 %v853_v20 }
 0x129   :  { %273 = vperm.xlu1 %773, %v35_v5  }
 0x12d   :  { %774 = vset.pattern.permute.xlu1 %v855_v56 }
 0x12e   :  { %279 = vperm.xlu1 %774, %v35_v5  }
 0x132   :  { %775 = vset.pattern.permute.xlu1 %v856_v58 }
 0x133   :  { %285 = vperm.xlu1 %775, %v35_v5  }
 0x143   :  { %v144_v6 = vpop.xlane.xlu0 %143 }
 0x149   :  { %v150_v8 = vpop.xlane.xlu0 %149 }
 0x14f   :  { %v147_v7 = vpop.xlane.xlu1 %146 }
 0x150   :  { %792 = vrcp.f32 %v147_v7 }
 0x151   :  { %794 = vrcp.f32 %v144_v6 }
 0x152   :  { %796 = vrcp.f32 %v150_v8 }
 0x153   :  { %v477_v10 = vpop.xlane.xlu0 %476 }
 0x155   :  { %v153_v9 = vpop.xlane.xlu1 %152 }
 0x156   :  { %798 = vrcp.f32 %v153_v9 }
 0x157   :  { %v483_v13 = vpop.xlane.xlu0 %482 }
 0x159   :  { %v480_v11 = vpop.xlane.xlu1 %479 }
 0x15a   :  { %800 = vrcp.f32 %v480_v11 }
 0x15b   :  { %802 = vrcp.f32 %v477_v10 }
 0x15c   :  { %804 = vrcp.f32 %v483_v13 }
 0x15d   :  { %v793_v12 = vpop.eup %792  ;;  %v171_v14 = vpop.permute.xlu1 %170 }
 0x15e   :  { %v795_v16 = vpop.eup %794  ;;  %v157_v17 = vmul.f32 %v793_v12, %v1111_v45 }
 0x15f   :  { %v166_v18 = vpop.permute.xlu0 %165  ;;  %v155_v19 = vmul.f32 %v795_v16, %v1103_v33  ;;  %v797_v0 = vpop.eup %796 }
 0x160   :  { %v173_v21 = vmul.f32 %v171_v14, %v157_v17  ;;  %v159_v23 = vmul.f32 %v797_v0, %v1107_v42 }
 0x161   :  { %v177_v20 = vpop.permute.xlu1 %176  ;;  %v168_v22 = vmul.f32 %v166_v18, %v155_v19 }
 0x162   :  { %v179_v27 = vmul.f32 %v177_v20, %v159_v23 }
 0x163   :  { %v799_v24 = vpop.eup %798  ;;  %v174_v1 = vadd.f32 %v173_v21, %v168_v22  ;;  %v293_v13 = vpop.permute.xlu0 %292 }
 0x164   :  { %v161_v28 = vmul.f32 %v799_v24, %v1119_v49 }
 0x165   :  { %v180_v34 = vadd.f32 %v179_v27, %v174_v1 }
 0x167   :  { %v801_v26 = vpop.eup %800 }
 0x168   :  { %v803_v29 = vpop.eup %802  ;;  %v490_v31 = vmul.f32 %v801_v26, %v1127_v53 }
 0x169   :  { %v488_v35 = vmul.f32 %v803_v29, %v1115_v47  ;;  %v805_v37 = vpop.eup %804 }
 0x16a   :  { %v498_v32 = vmul.f32 %v490_v31, %v171_v14  ;;  %v492_v39 = vmul.f32 %v805_v37, %v1123_v51 }
 0x16b   :  { %v497_v40 = vmul.f32 %v488_v35, %v166_v18 }
 0x16c   :  { %v500_v44 = vmul.f32 %v492_v39, %v177_v20 }
 0x16d   :  { %v499_v42 = vadd.f32 %v498_v32, %v497_v40 }
 0x16f   :  { %v501_v46 = vadd.f32 %v500_v44, %v499_v42 }
 0x193   :  { %v486_v25 = vpop.xlane.xlu1 %485 }
 0x194   :  { %806 = vrcp.f32 %v486_v25 }
 0x197   :  { %v183_v30 = vpop.permute.xlu1 %182 }
 0x198   :  { %v185_v33 = vmul.f32 %v183_v30, %v161_v28 }
 0x19a   :  { %v186_v36 = vadd.f32 %v185_v33, %v180_v34 }
 0x19b   :  { %v190_v38 = vpop.permute.xlu1 %189 }
 0x19c   :  { %741 = vmatmul.mubr.msk.f32.vlgmr.msra.gmra.mxu0 %vm117_vm8, %v186_v36 }
 0x19d   :  { %749 = vmatpush3.msra.mxu0 %v727_v15  ;;  %750 = vmatprep.mubr.msk.f32.mxu0 %vm858_vm13, %v857_v2 }
 0x19f   :  { %v269_v41 = vpop.permute.xlu1 %268 }
 0x1a0   :  { %v578_v49 = vmul.f32 %v488_v35, %v269_v41  ;;  %v271_v56 = vmul.f32 %v269_v41, %v155_v19 }
 0x1a1   :  { %v807_v43 = vpop.eup %806 }
 0x1a2   :  { %v494_v45 = vmul.f32 %v807_v43, %v1138_v62 }
 0x1a4   :  { %v502_v47 = vmul.f32 %v494_v45, %v183_v30  ;;  %v274_v48 = vpop.permute.xlu1 %273 }
 0x1a5   :  { %v579_v50 = vmul.f32 %v490_v31, %v274_v48  ;;  %v276_v54 = vmul.f32 %v274_v48, %v157_v17 }
 0x1a6   :  { %v503_v52 = vadd.f32 %v502_v47, %v501_v46 }
 0x1a7   :  { %v580_v53 = vadd.f32 %v579_v50, %v578_v49  ;;  %v277_v58 = vadd.f32 %v276_v54, %v271_v56 }
 0x1a8   :  { %751 = vmatmul.mubr.msk.f32.vlgmr.msra.gmra.mxu0 %vm117_vm8, %v503_v52 }
 0x1a9   :  { %v280_v55 = vpop.permute.xlu1 %279 }
 0x1aa   :  { %v282_v51 = vmul.f32 %v280_v55, %v159_v23  ;;  %v581_v57 = vmul.f32 %v492_v39, %v280_v55 }
 0x1ac   :  { %v283_v60 = vadd.f32 %v282_v51, %v277_v58  ;;  %v582_v61 = vadd.f32 %v581_v57, %v580_v53 }
 0x1ae   :  { %v286_v59 = vpop.permute.xlu1 %285 }
 0x1af   :  { %v288_v63 = vmul.f32 %v286_v59, %v161_v28  ;;  %v583_v62 = vmul.f32 %v494_v45, %v286_v59 }
 0x1b1   :  { %v289_v3 = vadd.f32 %v288_v63, %v283_v60  ;;  %v584_v4 = vadd.f32 %v583_v62, %v582_v61 }
 0x25c   :  { %v261_v5 = vpop.f32.mrf.mxu0 }
 0x25d   :  { %v262_v6 = vadd.f32 %v261_v5, %v190_v38 }
 0x25e   :  { %v742_v7 = vpop.f32.mrf.mxu0 }
 0x25f   :  { %808 = vtanh.f32 %v262_v6 }
 0x268   :  { %v573_v8 = vpop.f32.mrf.mxu0 }
 0x269   :  { %v574_v9 = vadd.f32 %v573_v8, %v190_v38 }
 0x26a   :  { %v752_v10 = vpop.f32.mrf.mxu0 }
 0x26b   :  { %810 = vtanh.f32 %v574_v9 }
 0x26c   :  { %v809_v11 = vpop.eup %808 }
 0x26d   :  { %744 = vmatpush3.msra.mxu1 %v809_v11 }
 0x26e   :  { %746 = vmatmul.mubr.msk.f32.vlgmr.msra.gmra.mxu1 %vm117_vm8, %v289_v3  ;;  %753 = vmatprep.subr.mxu1 %v857_v2 }
 0x26f   :  { %755 = vmatprep.mubr.msk.f32.mxu1 %vm858_vm13, %v857_v2 }
 0x278   :  { %v811_v12 = vpop.eup %810 }
 0x279   :  { %754 = vmatpush3.msra.mxu1 %v811_v12 }
 0x27a   :  { %756 = vmatmul.mubr.msk.f32.vlgmr.msra.gmra.mxu1 %vm117_vm8, %v584_v4 }
 0x32e   :  { %v364_v14 = vpop.f32.mrf.mxu1 }
 0x32f   :  { %v365_v16 = vadd.f32 %v364_v14, %v293_v13 }
 0x330   :  { %v747_v17 = vpop.f32.mrf.mxu1 }
 0x331   :  { %812 = vtanh.f32 %v365_v16 }
 0x33a   :  { %v654_v18 = vpop.f32.mrf.mxu1 }
 0x33b   :  { %v655_v19 = vadd.f32 %v654_v18, %v293_v13 }
 0x33c   :  { %v757_v0 = vpop.f32.mrf.mxu1 }
 0x33d   :  { %814 = vtanh.f32 %v655_v19 }
 0x33e   :  { %v813_v20 = vpop.eup %812 }
 0x33f   :  { %370 = vst.msk [vmem:[#allocation5] sm:$0xff] %vm369_vm14, %v813_v20 }
 0x34a   :  { %v815_v2 = vpop.eup %814 }
 0x34b   :  { %660 = vst.msk [vmem:[#allocation5 + $0x8] sm:$0xff] %vm369_vm14, %v815_v2 }
 0x34c   :  { %839 = shalt.err (!%p836_p9)
}
 0x34d   :  { %s860_s9 = smov 128   ;;  %s861_s10 = smov 8  }
 0x34e   :  { %672 = dma.vmem_to_hbm [thread:$0]  %s667_s0, 256, %s1188_s5, [#allocation3], %s860_s9, %s860_s9, %s861_s10  }
 0x34f   :  { %850 = dma.done.wait [#allocation3], 256  }
 0x350   :  { %851 = vsyncadd [#allocation3], 4294967040 }
 0x351   :  { %676 = vsyncpa [#allocation3], 1 }
 0x352   :  { %677 = vsyncpa [#allocation4], 1 }

</bundles_post_ra>
